<compile_context>
chip_gen: v7x
topology: tpu7x:2x2x1
jax: 0.10.0
libtpu: 0.0.40
codegen_flags: <defaults>
</compile_context>

<pallas_src>
import jax
import jax.numpy as jnp
from jax import lax
from jax.experimental import pallas as pl
from jax.experimental.pallas import tpu as pltpu

FILTER_SIZES = (3, 4, 5)
NUM_FILTERS = (100, 100, 100)
GROUP = 128                                # lane-padded width of each filter bank
F_PAD = GROUP * len(FILTER_SIZES)          # 384 pooled conv channels
CPACK = GROUP * sum(FILTER_SIZES)          # 1536 packed (group, tap) conv columns
K_MAX = max(FILTER_SIZES)                  # 5 taps


# --------------------------------------------------------------------------- #
# Kernel
# --------------------------------------------------------------------------- #
def _modify_head_kernel(x_ref, wl_ref, bl_ref, wconv_ref, bconv_ref,
                        wfc_ref, bfc_ref, o_ref):
    Bt, S, Hn = x_ref.shape
    n = Bt * S

    # self.linear on all Bt*S rows at once; f32 -> bf16 cast done in VMEM.
    x = x_ref[...].reshape(n, Hn).astype(jnp.bfloat16)                 # (n, Hn)
    h = jnp.dot(x, wl_ref[...], preferred_element_type=jnp.float32)    # f32 (n, H)
    h = (h + bl_ref[...]).astype(jnp.bfloat16)

    # Fused Conv1d(k=3,4,5): ONE lane-dense matmul over the 12 live
    # (group, tap) blocks, then per-tap XLU rolls to align time indices.
    y_all = jnp.dot(h, wconv_ref[...], preferred_element_type=jnp.float32)  # (n, 1536)

    # Time index, reused for the three groups' tail masks.
    t_idx = lax.broadcasted_iota(jnp.int32, (Bt, S, GROUP), 1)

    pools = []
    base = 0
    for k in FILTER_SIZES:
        yg = y_all[:, base:base + GROUP]
        for j in range(1, k):
            c0 = base + j * GROUP
            yg = yg + pltpu.roll(y_all[:, c0:c0 + GROUP], shift=n - j, axis=0)
        base += k * GROUP
        yg = yg.reshape(Bt, S, GROUP)
        # Rows t > S-k picked up rolled-in data from the next batch row; hard-mask
        # them so nothing can leak through the max (requires S >= k, asserted in
        # the wrapper).
        yg = jnp.where(t_idx <= S - k, yg, -jnp.inf)
        pools.append(jnp.max(yg, axis=1))                               # (Bt, GROUP)

    pooled = jnp.concatenate(pools, axis=1)                             # (Bt, F_PAD)
    # Per-channel conv bias is constant over time => add after the max; then ReLU.
    pooled = jnp.maximum(pooled + bconv_ref[...], 0.0)

    # dropout == identity at inference; final FC on lane-padded label columns.
    logits = jnp.dot(pooled.astype(jnp.bfloat16), wfc_ref[...],
                     preferred_element_type=jnp.float32) + bfc_ref[...]
    o_ref[...] = logits[None]                                           # (1, Bt, NLp)


# --------------------------------------------------------------------------- #
# Chip-aware tiling
# --------------------------------------------------------------------------- #
def _chip_config():
    """Per-generation budgets derived from the detected VMEM capacity."""
    vmem_cap = None
    try:
        info = pltpu.get_tpu_info()
        vmem_cap = int(getattr(info, "vmem_capacity_bytes", 0)) or None
    except Exception:
        vmem_cap = None

    if vmem_cap is not None and vmem_cap > (96 << 20):
        # v5e / v6e class: 128 MiB VMEM, single TensorCore -> big tiles, fewer steps.
        return dict(row_target=1024, tile_bytes_cap=16 << 20,
                    vmem_limit=96 << 20, two_cores=False)
    # v7x class (64 MiB VMEM, 2 TensorCores) or unknown -> conservative budgets.
    return dict(row_target=512, tile_bytes_cap=6 << 20,
                vmem_limit=40 << 20, two_cores=vmem_cap is not None)


def _pick_batch_tile(B, S, Hn, *, row_target, tile_bytes_cap, two_cores):
    """Rows per grid step: fill the MXU M-dim without blowing the VMEM budget."""
    bt_rows = max(1, row_target // S)
    bt_bytes = max(1, tile_bytes_cap // (S * Hn * 4))      # f32 input tile
    bt = max(1, min(bt_rows, bt_bytes, B))
    if two_cores and B > 1:
        # Guarantee >= 2 grid steps so both TensorCores get work.
        bt = min(bt, int(pl.cdiv(B, 2)))
    # Prefer Bt*S a multiple of 16 (bf16 sublane pack) so reshapes are free views.
    while bt > 1 and (bt * S) % 16 != 0:
        bt -= 1
    return bt


# --------------------------------------------------------------------------- #
# Parameter packing (call ONCE at model build, not per forward)
# --------------------------------------------------------------------------- #
def pack_params(params):
    """Fuse / lane-pad the PyTorch-layout weights into kernel operands."""
    NL = params["wfc"].shape[1]
    NLp = GROUP * int(pl.cdiv(NL, GROUP))
    H = params["wl"].shape[1]

    wconv = jnp.zeros((H, CPACK), jnp.float32)     # group-major, tap-minor blocks
    bconv = jnp.zeros((1, F_PAD), jnp.float32)
    wfc = jnp.zeros((F_PAD, NLp), jnp.float32)
    bfc = jnp.zeros((1, NLp), jnp.float32)

    base, off = 0, 0
    for g, (k, nf) in enumerate(zip(FILTER_SIZES, NUM_FILTERS)):
        for j in range(k):
            c0 = base + j * GROUP
            wconv = wconv.at[:, c0:c0 + nf].set(params[f"w{k}"][j])
        g0 = g * GROUP
        bconv = bconv.at[:, g0:g0 + nf].set(params[f"b{k}"])
        wfc = wfc.at[g0:g0 + nf, :NL].set(params["wfc"][off:off + nf])
        base += k * GROUP
        off += nf
    bfc = bfc.at[:, :NL].set(params["bfc"])

    return {
        "wl": params["wl"].astype(jnp.bfloat16),
        "bl": params["bl"].astype(jnp.float32),
        "wconv": wconv.astype(jnp.bfloat16),
        "bconv": bconv,
        "wfc": wfc.astype(jnp.bfloat16),
        "bfc": bfc,
        "num_labels": NL,
        "nl_pad": NLp,
        "hidden": H,
    }


# --------------------------------------------------------------------------- #
# Forward
# --------------------------------------------------------------------------- #
def modify_model_forward(hidden_cat, packed):
    """hidden_cat: (B, S, hidden_size * n_last_hidden) float32; packed = pack_params(...)."""
    B, S, Hn = hidden_cat.shape
    assert S >= K_MAX, f"sequence length {S} must be >= max filter size {K_MAX}"
    H = packed["hidden"]
    NL, NLp = packed["num_labels"], packed["nl_pad"]

    cfg = _chip_config()
    Bt = _pick_batch_tile(B, S, Hn, row_target=cfg["row_target"],
                          tile_bytes_cap=cfg["tile_bytes_cap"],
                          two_cores=cfg["two_cores"])
    G = int(pl.cdiv(B, Bt))
    if cfg["two_cores"] and G > 1 and G % 2 == 1:
        G += 1                                    # even grid -> both TCs stay busy
    B_pad = G * Bt
    if B_pad != B:
        hidden_cat = jnp.pad(hidden_cat, ((0, B_pad - B), (0, 0), (0, 0)))

    out = pl.pallas_call(
        _modify_head_kernel,
        out_shape=jax.ShapeDtypeStruct((G, Bt, NLp), jnp.float32),
        grid=(G,),
        in_specs=[
            pl.BlockSpec((Bt, S, Hn), lambda g: (g, 0, 0)),        # activations (f32, cast in-kernel)
            pl.BlockSpec((Hn, H), lambda g: (0, 0)),               # linear W (bf16)
            pl.BlockSpec((1, H), lambda g: (0, 0)),                # linear b (f32)
            pl.BlockSpec((H, CPACK), lambda g: (0, 0)),            # packed conv W (bf16, 1536)
            pl.BlockSpec((1, F_PAD), lambda g: (0, 0)),            # conv bias (f32)
            pl.BlockSpec((F_PAD, NLp), lambda g: (0, 0)),          # fc W (bf16, lane-padded)
            pl.BlockSpec((1, NLp), lambda g: (0, 0)),              # fc b (f32, lane-padded)
        ],
        out_specs=pl.BlockSpec((1, Bt, NLp), lambda g: (g, 0, 0)),
        compiler_params=pltpu.CompilerParams(
            dimension_semantics=("parallel",),
            vmem_limit_bytes=cfg["vmem_limit"],
        ),
    )(hidden_cat,
      packed["wl"], packed["bl"], packed["wconv"], packed["bconv"],
      packed["wfc"], packed["bfc"])

    return out.reshape(B_pad, NLp)[:B, :NL]


# --------------------------------------------------------------------------- #
# Pure-JAX reference (same bf16-in / f32-accumulate matmul scheme)
# --------------------------------------------------------------------------- #
def reference_forward(hidden_cat, params):
    bf16 = jnp.bfloat16
    x = hidden_cat.astype(bf16)
    h = jnp.einsum("bsh,hf->bsf", x, params["wl"].astype(bf16),
                   preferred_element_type=jnp.float32) + params["bl"]
    h = h.astype(bf16)
    B, S, _ = h.shape
    pools = []
    for k, nf in zip(FILTER_SIZES, NUM_FILTERS):
        w, b = params[f"w{k}"].astype(bf16), params[f"b{k}"]
        L = S - k + 1
        acc = jnp.zeros((B, L, nf), jnp.float32) + b[None]
        for j in range(k):
            acc = acc + jnp.einsum("bsh,hf->bsf", h[:, j:j + L, :], w[j],
                                   preferred_element_type=jnp.float32)
        acc = jnp.maximum(acc, 0.0)
        pools.append(jnp.max(acc, axis=1))
    pooled = jnp.concatenate(pools, axis=1)
    return jnp.einsum("bf,fl->bl", pooled.astype(bf16), params["wfc"].astype(bf16),
                      preferred_element_type=jnp.float32) + params["bfc"]


def init_params(key, hidden_size, n_last_hidden, num_labels):
    ks = jax.random.split(key, 10)
    Hn = hidden_size * n_last_hidden
    scale = 0.05
    params = {
        "wl":  scale * jax.random.normal(ks[0], (Hn, hidden_size), jnp.float32),
        "bl":  scale * jax.random.normal(ks[1], (1, hidden_size), jnp.float32),
        "wfc": scale * jax.random.normal(ks[2], (sum(NUM_FILTERS), num_labels), jnp.float32),
        "bfc": scale * jax.random.normal(ks[3], (1, num_labels), jnp.float32),
    }
    for i, (k, nf) in enumerate(zip(FILTER_SIZES, NUM_FILTERS)):
        # PyTorch Conv1d weight is (out_ch, in_ch, k); we store it as (k, in_ch, out_ch).
        params[f"w{k}"] = scale * jax.random.normal(ks[4 + i], (k, hidden_size, nf), jnp.float32)
        params[f"b{k}"] = scale * jax.random.normal(ks[7 + i], (1, nf), jnp.float32)
    return params


if __name__ == "__main__":
    # TODO(synk): the `self.bert` transformer backbone is not implemented; the kernel
    # consumes synthetic "last n hidden states" directly.
    B, S, H = 2, 16, 32
    n_last_hidden = 2
    num_labels = 3

    key = jax.random.PRNGKey(0)
    k_x, k_p = jax.random.split(key)
    hidden_cat = jax.random.normal(k_x, (B, S, H * n_last_hidden), jnp.float32)
    params = init_params(k_p, H, n_last_hidden, num_labels)

    packed = pack_params(params)                 # pack ONCE, reuse every forward
    logits = modify_model_forward(hidden_cat, packed)
    jax.block_until_ready(logits)

    ref = reference_forward(hidden_cat, params)
    assert logits.shape == (B, num_labels)
    assert jnp.allclose(logits, ref, atol=1e-2, rtol=1e-2), "mismatch vs reference"
    print("KERNEL_OK")
</pallas_src>

<mosaic_0001>
module attributes {stable_mosaic.version = 11 : i64} {
  func.func @_modify_head_kernel(%arg0: i32, %arg1: memref<2x16x64xf32, #tpu.memory_space<vmem>>, %arg2: memref<64x32xbf16, #tpu.memory_space<vmem>>, %arg3: memref<1x32xf32, #tpu.memory_space<vmem>>, %arg4: memref<32x1536xbf16, #tpu.memory_space<vmem>>, %arg5: memref<1x384xf32, #tpu.memory_space<vmem>>, %arg6: memref<384x128xbf16, #tpu.memory_space<vmem>>, %arg7: memref<1x128xf32, #tpu.memory_space<vmem>>, %arg8: memref<1x2x128xf32, #tpu.memory_space<vmem>>) attributes {dimension_semantics = [#tpu.dimension_semantics<parallel>], iteration_bounds = array<i64: 1>, scalar_prefetch = 0 : i64, scratch_operands = 0 : i64, tpu.core_type = #tpu.core_type<tc>, window_params = [{transform_indices = @transform_0, window_bounds = array<i64: 2, 16, 64>}, {pipeline_mode = #tpu.pipeline_mode<synchronous>, transform_indices = @transform_1, window_bounds = array<i64: 64, 32>}, {pipeline_mode = #tpu.pipeline_mode<synchronous>, transform_indices = @transform_2, window_bounds = array<i64: 1, 32>}, {pipeline_mode = #tpu.pipeline_mode<synchronous>, transform_indices = @transform_3, window_bounds = array<i64: 32, 1536>}, {pipeline_mode = #tpu.pipeline_mode<synchronous>, transform_indices = @transform_4, window_bounds = array<i64: 1, 384>}, {pipeline_mode = #tpu.pipeline_mode<synchronous>, transform_indices = @transform_5, window_bounds = array<i64: 384, 128>}, {pipeline_mode = #tpu.pipeline_mode<synchronous>, transform_indices = @transform_6, window_bounds = array<i64: 1, 128>}, {transform_indices = @transform_7, window_bounds = array<i64: 1, 2, 128>}]} {
    %c0 = arith.constant 0 : index
    %c0_0 = arith.constant 0 : index
    %c0_1 = arith.constant 0 : index
    %0 = vector.load %arg1[%c0, %c0_0, %c0_1] : memref<2x16x64xf32, #tpu.memory_space<vmem>>, vector<2x16x64xf32>
    %1 = vector.shape_cast %0 : vector<2x16x64xf32> to vector<32x64xf32>
    %2 = arith.truncf %1 : vector<32x64xf32> to vector<32x64xbf16>
    %c0_2 = arith.constant 0 : index
    %c0_3 = arith.constant 0 : index
    %3 = vector.load %arg2[%c0_2, %c0_3] : memref<64x32xbf16, #tpu.memory_space<vmem>>, vector<64x32xbf16>
    %cst = arith.constant dense<0.000000e+00> : vector<32x32xf32>
    %4 = tpu.matmul %2, %3, %cst {dimension_numbers = #tpu.dot_dimension_numbers<[1], [0], [0], [1], [0, 0, 1, 1], [], []>} : vector<32x64xbf16>, vector<64x32xbf16>, vector<32x32xf32> -> vector<32x32xf32>
    %c0_4 = arith.constant 0 : index
    %c0_5 = arith.constant 0 : index
    %5 = vector.load %arg3[%c0_4, %c0_5] : memref<1x32xf32, #tpu.memory_space<vmem>>, vector<1x32xf32>
    %6 = vector.broadcast %5 : vector<1x32xf32> to vector<32x32xf32>
    %7 = arith.addf %4, %6 : vector<32x32xf32>
    %8 = arith.truncf %7 : vector<32x32xf32> to vector<32x32xbf16>
    %c0_6 = arith.constant 0 : index
    %c0_7 = arith.constant 0 : index
    %9 = vector.load %arg4[%c0_6, %c0_7] : memref<32x1536xbf16, #tpu.memory_space<vmem>>, vector<32x1536xbf16>
    %cst_8 = arith.constant dense<0.000000e+00> : vector<32x1536xf32>
    %10 = tpu.matmul %8, %9, %cst_8 {dimension_numbers = #tpu.dot_dimension_numbers<[1], [0], [0], [1], [0, 0, 1, 1], [], []>} : vector<32x32xbf16>, vector<32x1536xbf16>, vector<32x1536xf32> -> vector<32x1536xf32>
    %11 = tpu.iota {dimensions = array<i32: 1>} : vector<2x16x128xi32>
    %12 = vector.extract_strided_slice %10 {offsets = [0, 0], sizes = [32, 128], strides = [1, 1]} : vector<32x1536xf32> to vector<32x128xf32>
    %13 = vector.extract_strided_slice %10 {offsets = [0, 128], sizes = [32, 128], strides = [1, 1]} : vector<32x1536xf32> to vector<32x128xf32>
    %c31_i32 = arith.constant 31 : i32
    %14 = tpu.dynamic_rotate %13 by %c31_i32 dim 0 : vector<32x128xf32>, i32 -> vector<32x128xf32>
    %15 = arith.addf %12, %14 : vector<32x128xf32>
    %16 = vector.extract_strided_slice %10 {offsets = [0, 256], sizes = [32, 128], strides = [1, 1]} : vector<32x1536xf32> to vector<32x128xf32>
    %c30_i32 = arith.constant 30 : i32
    %17 = tpu.dynamic_rotate %16 by %c30_i32 dim 0 : vector<32x128xf32>, i32 -> vector<32x128xf32>
    %18 = arith.addf %15, %17 : vector<32x128xf32>
    %19 = vector.shape_cast %18 : vector<32x128xf32> to vector<2x16x128xf32>
    %c13_i32 = arith.constant 13 : i32
    %20 = vector.broadcast %c13_i32 : i32 to vector<2x16x128xi32>
    %21 = arith.cmpi sle, %11, %20 : vector<2x16x128xi32>
    %cst_9 = arith.constant 0xFF800000 : f32
    %22 = vector.broadcast %cst_9 : f32 to vector<2x16x128xf32>
    %23 = arith.select %21, %19, %22 : vector<2x16x128xi1>, vector<2x16x128xf32>
    %cst_10 = arith.constant dense<0xFF800000> : vector<2x128xf32>
    %24 = vector.multi_reduction <maximumf>, %23, %cst_10 [1] : vector<2x16x128xf32> to vector<2x128xf32>
    %25 = vector.extract_strided_slice %10 {offsets = [0, 384], sizes = [32, 128], strides = [1, 1]} : vector<32x1536xf32> to vector<32x128xf32>
    %26 = vector.extract_strided_slice %10 {offsets = [0, 512], sizes = [32, 128], strides = [1, 1]} : vector<32x1536xf32> to vector<32x128xf32>
    %c31_i32_11 = arith.constant 31 : i32
    %27 = tpu.dynamic_rotate %26 by %c31_i32_11 dim 0 : vector<32x128xf32>, i32 -> vector<32x128xf32>
    %28 = arith.addf %25, %27 : vector<32x128xf32>
    %29 = vector.extract_strided_slice %10 {offsets = [0, 640], sizes = [32, 128], strides = [1, 1]} : vector<32x1536xf32> to vector<32x128xf32>
    %c30_i32_12 = arith.constant 30 : i32
    %30 = tpu.dynamic_rotate %29 by %c30_i32_12 dim 0 : vector<32x128xf32>, i32 -> vector<32x128xf32>
    %31 = arith.addf %28, %30 : vector<32x128xf32>
    %32 = vector.extract_strided_slice %10 {offsets = [0, 768], sizes = [32, 128], strides = [1, 1]} : vector<32x1536xf32> to vector<32x128xf32>
    %c29_i32 = arith.constant 29 : i32
    %33 = tpu.dynamic_rotate %32 by %c29_i32 dim 0 : vector<32x128xf32>, i32 -> vector<32x128xf32>
    %34 = arith.addf %31, %33 : vector<32x128xf32>
    %35 = vector.shape_cast %34 : vector<32x128xf32> to vector<2x16x128xf32>
    %c12_i32 = arith.constant 12 : i32
    %36 = vector.broadcast %c12_i32 : i32 to vector<2x16x128xi32>
    %37 = arith.cmpi sle, %11, %36 : vector<2x16x128xi32>
    %cst_13 = arith.constant 0xFF800000 : f32
    %38 = vector.broadcast %cst_13 : f32 to vector<2x16x128xf32>
    %39 = arith.select %37, %35, %38 : vector<2x16x128xi1>, vector<2x16x128xf32>
    %cst_14 = arith.constant dense<0xFF800000> : vector<2x128xf32>
    %40 = vector.multi_reduction <maximumf>, %39, %cst_14 [1] : vector<2x16x128xf32> to vector<2x128xf32>
    %41 = vector.extract_strided_slice %10 {offsets = [0, 896], sizes = [32, 128], strides = [1, 1]} : vector<32x1536xf32> to vector<32x128xf32>
    %42 = vector.extract_strided_slice %10 {offsets = [0, 1024], sizes = [32, 128], strides = [1, 1]} : vector<32x1536xf32> to vector<32x128xf32>
    %c31_i32_15 = arith.constant 31 : i32
    %43 = tpu.dynamic_rotate %42 by %c31_i32_15 dim 0 : vector<32x128xf32>, i32 -> vector<32x128xf32>
    %44 = arith.addf %41, %43 : vector<32x128xf32>
    %45 = vector.extract_strided_slice %10 {offsets = [0, 1152], sizes = [32, 128], strides = [1, 1]} : vector<32x1536xf32> to vector<32x128xf32>
    %c30_i32_16 = arith.constant 30 : i32
    %46 = tpu.dynamic_rotate %45 by %c30_i32_16 dim 0 : vector<32x128xf32>, i32 -> vector<32x128xf32>
    %47 = arith.addf %44, %46 : vector<32x128xf32>
    %48 = vector.extract_strided_slice %10 {offsets = [0, 1280], sizes = [32, 128], strides = [1, 1]} : vector<32x1536xf32> to vector<32x128xf32>
    %c29_i32_17 = arith.constant 29 : i32
    %49 = tpu.dynamic_rotate %48 by %c29_i32_17 dim 0 : vector<32x128xf32>, i32 -> vector<32x128xf32>
    %50 = arith.addf %47, %49 : vector<32x128xf32>
    %51 = vector.extract_strided_slice %10 {offsets = [0, 1408], sizes = [32, 128], strides = [1, 1]} : vector<32x1536xf32> to vector<32x128xf32>
    %c28_i32 = arith.constant 28 : i32
    %52 = tpu.dynamic_rotate %51 by %c28_i32 dim 0 : vector<32x128xf32>, i32 -> vector<32x128xf32>
    %53 = arith.addf %50, %52 : vector<32x128xf32>
    %54 = vector.shape_cast %53 : vector<32x128xf32> to vector<2x16x128xf32>
    %c11_i32 = arith.constant 11 : i32
    %55 = vector.broadcast %c11_i32 : i32 to vector<2x16x128xi32>
    %56 = arith.cmpi sle, %11, %55 : vector<2x16x128xi32>
    %cst_18 = arith.constant 0xFF800000 : f32
    %57 = vector.broadcast %cst_18 : f32 to vector<2x16x128xf32>
    %58 = arith.select %56, %54, %57 : vector<2x16x128xi1>, vector<2x16x128xf32>
    %cst_19 = arith.constant dense<0xFF800000> : vector<2x128xf32>
    %59 = vector.multi_reduction <maximumf>, %58, %cst_19 [1] : vector<2x16x128xf32> to vector<2x128xf32>
    %60 = tpu.concatenate %24, %40, %59 in 1 : vector<2x128xf32>, vector<2x128xf32>, vector<2x128xf32> -> vector<2x384xf32>
    %c0_20 = arith.constant 0 : index
    %c0_21 = arith.constant 0 : index
    %61 = vector.load %arg5[%c0_20, %c0_21] : memref<1x384xf32, #tpu.memory_space<vmem>>, vector<1x384xf32>
    %62 = vector.broadcast %61 : vector<1x384xf32> to vector<2x384xf32>
    %63 = arith.addf %60, %62 : vector<2x384xf32>
    %cst_22 = arith.constant 0.000000e+00 : f32
    %64 = vector.broadcast %cst_22 : f32 to vector<2x384xf32>
    %65 = arith.maximumf %63, %64 : vector<2x384xf32>
    %66 = arith.truncf %65 : vector<2x384xf32> to vector<2x384xbf16>
    %c0_23 = arith.constant 0 : index
    %c0_24 = arith.constant 0 : index
    %67 = vector.load %arg6[%c0_23, %c0_24] : memref<384x128xbf16, #tpu.memory_space<vmem>>, vector<384x128xbf16>
    %cst_25 = arith.constant dense<0.000000e+00> : vector<2x128xf32>
    %68 = tpu.matmul %66, %67, %cst_25 {dimension_numbers = #tpu.dot_dimension_numbers<[1], [0], [0], [1], [0, 0, 1, 1], [], []>} : vector<2x384xbf16>, vector<384x128xbf16>, vector<2x128xf32> -> vector<2x128xf32>
    %c0_26 = arith.constant 0 : index
    %c0_27 = arith.constant 0 : index
    %69 = vector.load %arg7[%c0_26, %c0_27] : memref<1x128xf32, #tpu.memory_space<vmem>>, vector<1x128xf32>
    %70 = vector.broadcast %69 : vector<1x128xf32> to vector<2x128xf32>
    %71 = arith.addf %68, %70 : vector<2x128xf32>
    %72 = vector.shape_cast %71 : vector<2x128xf32> to vector<1x2x128xf32>
    %c0_28 = arith.constant 0 : index
    %c0_29 = arith.constant 0 : index
    %c0_30 = arith.constant 0 : index
    %73 = vector.load %arg8[%c0_28, %c0_29, %c0_30] : memref<1x2x128xf32, #tpu.memory_space<vmem>>, vector<1x2x128xf32>
    tpu.vector_store %arg8[%c0_28, %c0_29, %c0_30], %72 {strides = array<i32>} : memref<1x2x128xf32, #tpu.memory_space<vmem>>, vector<1x2x128xf32>,
    return
  }
  func.func @transform_0(%arg0: i32) -> (i32, i32, i32) {
    %c0_i32 = arith.constant 0 : i32
    %c0_i32_0 = arith.constant 0 : i32
    %c0_i32_1 = arith.constant 0 : i32
    return %arg0, %c0_i32, %c0_i32_0 : i32, i32, i32
  }
  func.func @transform_1(%arg0: i32) -> (i32, i32) {
    %c0_i32 = arith.constant 0 : i32
    %c0_i32_0 = arith.constant 0 : i32
    %c0_i32_1 = arith.constant 0 : i32
    return %c0_i32, %c0_i32_0 : i32, i32
  }
  func.func @transform_2(%arg0: i32) -> (i32, i32) {
    %c0_i32 = arith.constant 0 : i32
    %c0_i32_0 = arith.constant 0 : i32
    %c0_i32_1 = arith.constant 0 : i32
    return %c0_i32, %c0_i32_0 : i32, i32
  }
  func.func @transform_3(%arg0: i32) -> (i32, i32) {
    %c0_i32 = arith.constant 0 : i32
    %c0_i32_0 = arith.constant 0 : i32
    %c0_i32_1 = arith.constant 0 : i32
    return %c0_i32, %c0_i32_0 : i32, i32
  }
  func.func @transform_4(%arg0: i32) -> (i32, i32) {
    %c0_i32 = arith.constant 0 : i32
    %c0_i32_0 = arith.constant 0 : i32
    %c0_i32_1 = arith.constant 0 : i32
    return %c0_i32, %c0_i32_0 : i32, i32
  }
  func.func @transform_5(%arg0: i32) -> (i32, i32) {
    %c0_i32 = arith.constant 0 : i32
    %c0_i32_0 = arith.constant 0 : i32
    %c0_i32_1 = arith.constant 0 : i32
    return %c0_i32, %c0_i32_0 : i32, i32
  }
  func.func @transform_6(%arg0: i32) -> (i32, i32) {
    %c0_i32 = arith.constant 0 : i32
    %c0_i32_0 = arith.constant 0 : i32
    %c0_i32_1 = arith.constant 0 : i32
    return %c0_i32, %c0_i32_0 : i32, i32
  }
  func.func @transform_7(%arg0: i32) -> (i32, i32, i32) {
    %c0_i32 = arith.constant 0 : i32
    %c0_i32_0 = arith.constant 0 : i32
    %c0_i32_1 = arith.constant 0 : i32
    return %arg0, %c0_i32, %c0_i32_0 : i32, i32, i32
  }
}

</mosaic_0001>

<bundles_post_ra>
// kernel: tpu_custom_call.1
= control target key start
LH: loop header
LB: loop body
LE: loop exit
PB: predicated region body
PF: predicated region fallthrough
CT: control target
= control target key end

     0   :  { %12 = vsyncpa [#allocation3], 0  ;;  %s1740_s0 = inlined_call_operand.vmem [shape: f32[2,16,64], index: 0, kind: input, shape index: {}]   ;;  %s1741_s1 = inlined_call_operand.vmem [shape: bf16[64,32], index: 1, kind: input, shape index: {}]   ;;  %s1742_s2 = inlined_call_operand.vmem [shape: f32[1,32], index: 2, kind: input, shape index: {}]   ;;  %s1743_s3 = inlined_call_operand.hbm [shape: bf16[32,1536], index: 3, kind: input, shape index: {}]   ;;  %s1744_s4 = inlined_call_operand.vmem [shape: f32[1,384], index: 4, kind: input, shape index: {}]   ;;  %s1745_s5 = inlined_call_operand.hbm [shape: bf16[384,128], index: 5, kind: input, shape index: {}]   ;;  %s1746_s6 = inlined_call_operand.vmem [shape: f32[1,128], index: 6, kind: input, shape index: {}]   ;;  %s1747_s7 = inlined_call_operand.hbm [shape: f32[1,2,128], index: 7, kind: output, shape index: {}]  }
   0x1   :  { %13 = vsyncpa [#allocation6], 0 }
   0x2   :  { %14 = vsyncpa [#allocation4], 0  ;;  %s1425_s24 = smov [#allocation2]   ;;  %s1353_s28 = scalar_lea.hbm %s1743_s3, 3072 }
   0x3   :  { %s26_s25 = sshll.u32 %s1425_s24, 4  ;;  %p1354_p0 = scmp.ne.s32.totalorder %s1743_s3, %s1353_s28  ;;  %s27_s25 = int_to_ptr.vmem [resolvable:$true] %s26_s25 }
   0x4   :  { %p1357_p1 = scmp.lt.u32.totalorder %s1353_s28, %s1743_s3 }
   0x6   :  { %p1359_p2 = pnand %p1357_p1, %p1354_p0 }
   0x8   :  { %1362 = shalt.err (!%p1359_p2)
}
   0x9   :  { %s1363_s10 = scalar_lea.vmem %s27_s25, 3072  ;;  %p1368_p4 = scmp.lt.s32.totalorder %s27_s25, %s27_s25 }
   0xa   :  { %p1364_p3 = scmp.ne.s32.totalorder %s27_s25, %s1363_s10  ;;  %p1369_p5 = scmp.lt.s32.totalorder %s1363_s10, %s1363_s10 }
   0xc   :  { %p1370_p6 = por %p1369_p5, %p1368_p4 }
   0xe   :  { %p1371_p7 = pnand %p1370_p6, %p1364_p3 }
  0x10   :  { %1374 = shalt.err (!%p1371_p7)
}
  0x11   :  { %s1426_s11 = smov 768   ;;  %s1427_s12 = smov 48  }
  0x12   :  { %32 = dma.hbm_to_vmem [thread:$0]  %s1743_s3, 3072, %s27_s25, [#allocation3], %s1426_s11, %s1426_s11, %s1427_s12  }
  0x13   :  { %s1428_s15 = smov [#allocation5]   ;;  %s1375_s19 = scalar_lea.hbm %s1745_s5, 3072 }
  0x14   :  { %s40_s16 = sshll.u32 %s1428_s15, 4  ;;  %p1376_p8 = scmp.ne.s32.totalorder %s1745_s5, %s1375_s19  ;;  %s41_s16 = int_to_ptr.vmem [resolvable:$true] %s40_s16 }
  0x15   :  { %p1379_p9 = scmp.lt.u32.totalorder %s1375_s19, %s1745_s5 }
  0x17   :  { %p1381_p10 = pnand %p1379_p9, %p1376_p8 }
  0x19   :  { %1384 = shalt.err (!%p1381_p10)
}
  0x1a   :  { %s1385_s24 = scalar_lea.vmem %s41_s16, 3072  ;;  %p1390_p12 = scmp.lt.s32.totalorder %s41_s16, %s41_s16 }
  0x1b   :  { %p1386_p11 = scmp.ne.s32.totalorder %s41_s16, %s1385_s24  ;;  %p1391_p13 = scmp.lt.s32.totalorder %s1385_s24, %s1385_s24 }
  0x1d   :  { %p1392_p0 = por %p1391_p13, %p1390_p12 }
  0x1f   :  { %p1393_p1 = pnand %p1392_p0, %p1386_p11 }
  0x21   :  { %1396 = shalt.err (!%p1393_p1)
}
  0x22   :  { %s1429_s3 = smov 64   ;;  %s1430_s25 = smov 4  }
  0x23   :  { %46 = dma.hbm_to_vmem [thread:$0]  %s1745_s5, 3072, %s41_s16, [#allocation6], %s1429_s3, %s1429_s3, %s1430_s25  }
  0x24   :  { %1419 = dma.done.wait [#allocation3], 3072  }
  0x25   :  { %1420 = vsyncadd [#allocation3], 4294964224 }
  0x26   :  { %1421 = dma.done.wait [#allocation6], 3072  }
  0x27   :  { %1422 = vsyncadd [#allocation6], 4294964224  ;;  %v1289_v0 = vld [vmem:[%s1741_s1] sm:$0xff]   ;;  %v1290_v1 = vld [vmem:[%s1741_s1 + $0x8] sm:$0xff]   ;;  %vm101_vm0 = vcmask 523264   ;;  %v1431_v19 = vmov 0  }
  0x28   :  { %1243 = vmatprep.subr.bf16.mxu0 %v1289_v0  ;;  %v1291_v2 = vld [vmem:[%s1741_s1 + $0x10] sm:$0xff]   ;;  %v56_v3 = vld [vmem:[%s1740_s0] sm:$0xff]  ;;  %v57_v4 = vld [vmem:[%s1740_s0 + $0x8] sm:$0xff]  ;;  %342 = vmatprep.mubr.bf16.mxu1 %v1431_v19  ;;  %vm303_vm1 = vcmask 261120   ;;  %v1432_v57 = vmov 0.0   ;;  %vm1433_vm2 = vmmov 0  }
  0x29   :  { %1244 = vmatpush3.bf16.msra.mxu0 %v1289_v0  ;;  %v60_v5 = vpack.c.bf16 %v57_v4, %v56_v3  ;;  %v1292_v6 = vld [vmem:[%s1741_s1 + $0x18] sm:$0xff]   ;;  %v1293_v7 = vld [vmem:[#allocation2 + $0x4] ss:$48 sps:$4 sm:$0xff]   ;;  %v1295_v12 = vld [vmem:[#allocation2] ss:$48 sps:$4 sm:$0xff]   ;;  %vm805_vm9 = vcmask 1041409  }
  0x2a   :  { %1245 = vmatprep.subr.bf16.mxu0 %v1290_v1  ;;  %310 = vmatprep.subr.bf16.mxu1 %v1293_v7  ;;  %v58_v8 = vld [vmem:[%s1740_s0 + $0x10] sm:$0xff]  ;;  %v59_v9 = vld [vmem:[%s1740_s0 + $0x18] sm:$0xff]  ;;  %v1138_v21 = vld [vmem:[%s1742_s2] ss:$0 sm:$0xff]  ;;  %v628_v7 = vlaneseq  ;;  %s1434_s22 = smov [#allocation7]  }
  0x2b   :  { %1251 = vmatprep.mubr.msk.bf16.mxu0 %vm101_vm0, %v60_v5  ;;  %v61_v10 = vpack.c.bf16 %v59_v9, %v58_v8  ;;  %v1298_v11 = vld [vmem:[#allocation2 + $0xc] ss:$48 sps:$4 sm:$0xff]   ;;  %v1296_v13 = vld [vmem:[#allocation2 + $0x8] ss:$48 sps:$4 sm:$0xff]   ;;  %311 = vmatpush1.bf16.msra.mxu1 %v1295_v12  ;;  %v1299_v14 = vld [vmem:[#allocation2 + $0x64] ss:$48 sps:$4 sm:$0xff]  }
  0x2c   :  { %v1304_v15 = vld [vmem:[#allocation2 + $0x6c] ss:$48 sps:$4 sm:$0xff]   ;;  %v1301_v16 = vld [vmem:[#allocation2 + $0x60] ss:$48 sps:$4 sm:$0xff]   ;;  %v1302_v17 = vld [vmem:[#allocation2 + $0x68] ss:$48 sps:$4 sm:$0xff]   ;;  %312 = vmatprep.subr.bf16.mxu1 %v1299_v14 }
  0x2d   :  { %1246 = vmatpush3.bf16.msra.mxu0 %v1290_v1  ;;  %v1307_v18 = vld [vmem:[#allocation2 + $0x1c] ss:$48 sps:$4 sm:$0xff]   ;;  %v1305_v30 = vld [vmem:[#allocation2 + $0x18] ss:$48 sps:$4 sm:$0xff]   ;;  %v1313_v34 = vld [vmem:[#allocation2 + $0x14] ss:$48 sps:$4 sm:$0xff]  }
  0x2e   :  { %1247 = vmatprep.subr.bf16.mxu0 %v1291_v2  ;;  %v1310_v32 = vld [vmem:[#allocation2 + $0x7c] ss:$48 sps:$4 sm:$0xff]   ;;  %v1308_v33 = vld [vmem:[#allocation2 + $0x78] ss:$48 sps:$4 sm:$0xff]   ;;  %v1311_v39 = vld [vmem:[#allocation2 + $0x10] ss:$48 sps:$4 sm:$0xff]  }
  0x2f   :  { %313 = vmatpush1.bf16.msra.mxu1 %v1301_v16  ;;  %v1316_v35 = vld [vmem:[#allocation2 + $0x2c] ss:$48 sps:$4 sm:$0xff]   ;;  %v1314_v36 = vld [vmem:[#allocation2 + $0x28] ss:$48 sps:$4 sm:$0xff]   ;;  %v1319_v40 = vld [vmem:[#allocation2 + $0x74] ss:$48 sps:$4 sm:$0xff]  }
  0x30   :  { %1275 = vmatprep.subr.bf16.mxu1 %v1298_v11  ;;  %v1322_v37 = vld [vmem:[#allocation2 + $0x8c] ss:$48 sps:$4 sm:$0xff]   ;;  %v1320_v38 = vld [vmem:[#allocation2 + $0x88] ss:$48 sps:$4 sm:$0xff]   ;;  %v1317_v41 = vld [vmem:[#allocation2 + $0x70] ss:$48 sps:$4 sm:$0xff]  }
  0x31   :  { %1248 = vmatpush3.bf16.msra.mxu0 %v1291_v2  ;;  %v1325_v42 = vld [vmem:[#allocation2 + $0x24] ss:$48 sps:$4 sm:$0xff]   ;;  %v1323_v43 = vld [vmem:[#allocation2 + $0x20] ss:$48 sps:$4 sm:$0xff]   ;;  %v1331_v48 = vld [vmem:[#allocation5 + $0x48] sm:$0xff]   ;;  %v1550_v8 = vshrl.u32 %v628_v7, 7 }
  0x32   :  { %1249 = vmatprep.subr.bf16.mxu0 %v1292_v6  ;;  %v1328_v44 = vld [vmem:[#allocation2 + $0x84] ss:$48 sps:$4 sm:$0xff]   ;;  %v1326_v45 = vld [vmem:[#allocation2 + $0x80] ss:$48 sps:$4 sm:$0xff]   ;;  %v1332_v49 = vld [vmem:[#allocation5 + $0x8] sm:$0xff]   ;;  %s1128_s23 = sshll.u32 %s1434_s22, 4  ;;  %s1129_s23 = int_to_ptr.vmem [resolvable:$true] %s1128_s23 }
  0x33   :  { %v1329_v46 = vld [vmem:[#allocation5 + $0x40] sm:$0xff]   ;;  %v1333_v50 = vld [vmem:[#allocation5 + $0x50] sm:$0xff]   ;;  %v1335_v52 = vld [vmem:[#allocation5 + $0x58] sm:$0xff]   ;;  %vm648_vm3 = vcmp.lt.s32.totalorder %v1550_v8, 6  ;;  %vm635_vm4 = vcmp.lt.s32.totalorder %v1550_v8, 7  ;;  %vm705_vm5 = vcmp.lt.s32.totalorder %v1550_v8, 5  ;;  %p1402_p3 = scmp.lt.s32.totalorder %s1129_s23, %s1129_s23 }
  0x34   :  { %v1330_v47 = vld [vmem:[#allocation5] sm:$0xff]   ;;  %v1334_v51 = vld [vmem:[#allocation5 + $0x10] sm:$0xff]   ;;  %v1336_v53 = vld [vmem:[#allocation5 + $0x18] sm:$0xff]   ;;  %vm774_vm7 = vcmp.lt.s32.totalorder %v1550_v8, 4  ;;  %s1397_s24 = scalar_lea.vmem %s1129_s23, 32 }
  0x35   :  { %1250 = vmatpush3.bf16.msra.mxu0 %v1292_v6  ;;  %v1337_v54 = vld [vmem:[#allocation5 + $0x60] sm:$0xff]   ;;  %v1340_v58 = vld [vmem:[#allocation5 + $0x68] sm:$0xff]   ;;  %v1343_v61 = vld [vmem:[#allocation5 + $0x70] sm:$0xff]   ;;  %p1398_p2 = scmp.ne.s32.totalorder %s1129_s23, %s1397_s24  ;;  %p1403_p4 = scmp.lt.s32.totalorder %s1397_s24, %s1397_s24 }
  0x36   :  { %363 = vmatprep.subr.bf16.mxu0 %v1298_v11  ;;  %v1338_v55 = vld [vmem:[#allocation5 + $0x20] sm:$0xff]   ;;  %v1341_v59 = vld [vmem:[#allocation5 + $0x28] sm:$0xff]   ;;  %v1344_v62 = vld [vmem:[#allocation5 + $0x30] sm:$0xff]  }
  0x37   :  { %v1339_v56 = vld [vmem:[#allocation5 + $0x80] sm:$0xff]   ;;  %v1342_v60 = vld [vmem:[#allocation5 + $0x88] sm:$0xff]   ;;  %v1345_v63 = vld [vmem:[#allocation5 + $0x90] sm:$0xff]   ;;  %p1404_p5 = por %p1403_p4, %p1402_p3 }
  0x38   :  { %1252 = vmatmul.mubr.msk.bf16.vlgmr.msra.gmra.mrb[0].mxu0 %vm101_vm0, %v61_v10  ;;  %v1346_v0 = vld [vmem:[#allocation5 + $0x78] sm:$0xff]   ;;  %v1349_v3 = vld [vmem:[#allocation5 + $0xa0] sm:$0xff]   ;;  %v1350_v4 = vld [vmem:[#allocation5 + $0xa8] sm:$0xff]  }
  0x39   :  { %364 = vmatpush1.bf16.msra.mxu0 %v1296_v13  ;;  %395 = vmatprep.mubr.bf16.mxu0 %v1431_v19  ;;  %v1347_v1 = vld [vmem:[#allocation5 + $0x38] sm:$0xff]   ;;  %v1351_v5 = vld [vmem:[#allocation5 + $0xb0] sm:$0xff]   ;;  %p1405_p6 = pnand %p1404_p5, %p1398_p2 }
  0x3a   :  { %365 = vmatprep.subr.bf16.mxu0 %v1304_v15  ;;  %v1348_v2 = vld [vmem:[#allocation5 + $0x98] sm:$0xff]  }
  0x3b   :  { %v1352_v6 = vld [vmem:[#allocation5 + $0xb8] sm:$0xff]  }
  0x3d   :  { %366 = vmatpush1.bf16.msra.mxu0 %v1302_v17 }
  0x3e   :  { %469 = vmatprep.subr.bf16.mxu0 %v1307_v18 }
 0x10b   :  { %v1253_v20 = vpop.f32.mrb[0].mxu0 }
 0x10c   :  { %v142_v22 = vpop.f32.mrb[1].mxu0  ;;  %v151_v24 = vadd.f32 %v1253_v20, %v1138_v21 }
 0x10d   :  { %v1254_v23 = vpop.f32.mrb[2].mxu0  ;;  %v143_v27 = vadd.f32 %v1138_v21, %v142_v22 }
 0x10e   :  { %v154_v25 = vadd.f32 %v1254_v23, %v1138_v21  ;;  %v145_v26 = vpop.f32.mrb[3].mxu0 }
 0x10f   :  { %v146_v28 = vadd.f32 %v1138_v21, %v145_v26 }
 0x110   :  { %v158_v29 = vpack.c.bf16 %v154_v25, %v151_v24 }
 0x111   :  { %v157_v31 = vpack.c.bf16 %v146_v28, %v143_v27 }
 0x113   :  { %1169 = vmatmul.mubr.msk.bf16.vlgmr.msra.gmra.mrb[0].mxu1 %vm303_vm1, %v157_v31  ;;  %1171 = vmatmul.mubr.msk.bf16.vlgmr.msra.gmra.mrb[4].mxu0 %vm303_vm1, %v157_v31 }
 0x114   :  { %1277 = vmatpush1.bf16.msra.mxu1 %v1296_v13  ;;  %470 = vmatpush1.bf16.msra.mxu0 %v1305_v30 }
 0x115   :  { %471 = vmatprep.subr.bf16.mxu0 %v1310_v32  ;;  %352 = vmatprep.mubr.bf16.mxu1 %v1431_v19 }
 0x116   :  { %1276 = vmatprep.subr.bf16.mxu1 %v1304_v15  ;;  %501 = vmatprep.mubr.bf16.mxu0 %v1431_v19 }
 0x118   :  { %472 = vmatpush1.bf16.msra.mxu0 %v1308_v33  ;;  %1278 = vmatpush1.bf16.msra.mxu1 %v1302_v17 }
 0x119   :  { %416 = vmatprep.subr.bf16.mxu1 %v1313_v34  ;;  %575 = vmatprep.subr.bf16.mxu0 %v1316_v35 }
 0x11b   :  { %1170 = vmatmul.mubr.msk.bf16.gmra.mrb[4].mxu1 %vm303_vm1, %v158_v29  ;;  %1175 = vmatmul.mubr.msk.bf16.vlgmr.msra.gmra.mrb[8].mxu0 %vm303_vm1, %v157_v31 }
 0x11c   :  { %405 = vmatprep.mubr.bf16.mxu1 %v1431_v19  ;;  %511 = vmatprep.mubr.bf16.mxu0 %v1431_v19 }
 0x11d   :  { %576 = vmatpush1.bf16.msra.mxu0 %v1314_v36 }
 0x11e   :  { %577 = vmatprep.subr.bf16.mxu0 %v1322_v37 }
 0x121   :  { %578 = vmatpush1.bf16.msra.mxu0 %v1320_v38 }
 0x122   :  { %1255 = vmatprep.subr.bf16.mxu0 %v1432_v57 }
 0x123   :  { %1172 = vmatmul.mubr.msk.bf16.vlgmr.msra.gmra.mrb[8].mxu1 %vm303_vm1, %v158_v29  ;;  %1176 = vmatmul.mubr.msk.bf16.gmra.mrb[12].mxu0 %vm303_vm1, %v158_v29 }
 0x124   :  { %417 = vmatpush1.bf16.msra.mxu1 %v1311_v39  ;;  %448 = vmatprep.mubr.bf16.mxu1 %v1431_v19 }
 0x125   :  { %418 = vmatprep.subr.bf16.mxu1 %v1319_v40  ;;  %607 = vmatprep.mubr.bf16.mxu0 %v1431_v19 }
 0x128   :  { %419 = vmatpush1.bf16.msra.mxu1 %v1317_v41 }
 0x129   :  { %522 = vmatprep.subr.bf16.mxu1 %v1325_v42  ;;  %v1578_v42 = vadd.s32 8, %v1550_v8 }
 0x12b   :  { %1173 = vmatmul.mubr.msk.bf16.vlgmr.msra.gmra.mrb[12].mxu1 %vm303_vm1, %v157_v31  ;;  %1179 = vmatmul.mubr.msk.bf16.vlgmr.msra.gmra.mrb[16].mxu0 %vm303_vm1, %v157_v31  ;;  %vm658_vm6 = vcmp.le.s32.totalorder %v1578_v42, 13  ;;  %vm715_vm8 = vcmp.le.s32.totalorder %v1578_v42, 12  ;;  %vm784_vm10 = vcmp.le.s32.totalorder %v1578_v42, 11 }
 0x12c   :  { %523 = vmatpush1.bf16.msra.mxu1 %v1323_v43  ;;  %458 = vmatprep.mubr.bf16.mxu1 %v1431_v19 }
 0x12d   :  { %524 = vmatprep.subr.bf16.mxu1 %v1328_v44  ;;  %617 = vmatprep.mubr.bf16.mxu0 %v1431_v19 }
 0x12e   :  { %1256 = vmatpush3.bf16.msra.mxu0 %v1339_v56 }
 0x12f   :  { %1257 = vmatprep.subr.bf16.mxu0 %v1432_v57 }
 0x130   :  { %525 = vmatpush1.bf16.msra.mxu1 %v1326_v45 }
 0x131   :  { %1212 = vmatprep.subr.bf16.mxu1 %v1329_v46 }
 0x132   :  { %1258 = vmatpush3.bf16.msra.mxu0 %v1342_v60 }
 0x133   :  { %1174 = vmatmul.mubr.msk.bf16.gmra.mrb[16].mxu1 %vm303_vm1, %v158_v29  ;;  %1180 = vmatmul.mubr.msk.bf16.gmra.mrb[20].mxu0 %vm303_vm1, %v158_v29 }
 0x134   :  { %554 = vmatprep.mubr.bf16.mxu1 %v1431_v19  ;;  %1259 = vmatprep.subr.bf16.mxu0 %v1432_v57 }
 0x135   :  { %1271 = vmatprep.mubr.msk.bf16.mxu0 %vm1433_vm2, %v1432_v57 }
 0x136   :  { %1260 = vmatpush3.bf16.msra.mxu0 %v1345_v63 }
 0x137   :  { %1261 = vmatprep.subr.bf16.mxu0 %v1432_v57 }
 0x13a   :  { %1262 = vmatpush3.bf16.msra.mxu0 %v1348_v2 }
 0x13b   :  { %1177 = vmatmul.mubr.msk.bf16.vlgmr.msra.gmra.mrb[20].mxu1 %vm303_vm1, %v157_v31  ;;  %1263 = vmatprep.subr.bf16.mxu0 %v1432_v57 }
 0x13c   :  { %564 = vmatprep.mubr.bf16.mxu1 %v1431_v19  ;;  %1213 = vmatpush3.bf16.msra.mxu1 %v1330_v47 }
 0x13d   :  { %1214 = vmatprep.subr.bf16.mxu1 %v1331_v48 }
 0x13e   :  { %1264 = vmatpush3.bf16.msra.mxu0 %v1349_v3 }
 0x13f   :  { %1265 = vmatprep.subr.bf16.mxu0 %v1432_v57 }
 0x140   :  { %1215 = vmatpush3.bf16.msra.mxu1 %v1332_v49 }
 0x141   :  { %1216 = vmatprep.subr.bf16.mxu1 %v1333_v50 }
 0x142   :  { %1266 = vmatpush3.bf16.msra.mxu0 %v1350_v4 }
 0x143   :  { %1178 = vmatmul.mubr.msk.bf16.gmra.mrb[24].mxu1 %vm303_vm1, %v158_v29  ;;  %1267 = vmatprep.subr.bf16.mxu0 %v1432_v57 }
 0x144   :  { %1217 = vmatpush3.bf16.msra.mxu1 %v1334_v51 }
 0x145   :  { %1218 = vmatprep.subr.bf16.mxu1 %v1335_v52 }
 0x146   :  { %1268 = vmatpush3.bf16.msra.mxu0 %v1351_v5 }
 0x147   :  { %1269 = vmatprep.subr.bf16.mxu0 %v1432_v57 }
 0x148   :  { %1219 = vmatpush3.bf16.msra.mxu1 %v1336_v53 }
 0x149   :  { %1220 = vmatprep.subr.bf16.mxu1 %v1337_v54 }
 0x14a   :  { %1270 = vmatpush3.bf16.msra.mxu0 %v1352_v6 }
 0x14c   :  { %1221 = vmatpush3.bf16.msra.mxu1 %v1338_v55 }
 0x14d   :  { %1222 = vmatprep.subr.bf16.mxu1 %v1340_v58 }
 0x150   :  { %1223 = vmatpush3.bf16.msra.mxu1 %v1341_v59 }
 0x151   :  { %1224 = vmatprep.subr.bf16.mxu1 %v1343_v61 }
 0x154   :  { %1225 = vmatpush3.bf16.msra.mxu1 %v1344_v62 }
 0x155   :  { %1226 = vmatprep.subr.bf16.mxu1 %v1346_v0 }
 0x158   :  { %1227 = vmatpush3.bf16.msra.mxu1 %v1347_v1 }
 0x1e6   :  { %v344_v9 = vpop.f32.mrb[0].mxu1  ;;  %v397_v10 = vpop.f32.mrb[4].mxu0 }
 0x1e7   :  { %v346_v11 = vpop.f32.mrb[1].mxu1  ;;  %v1552_v12 = vpop.f32.mrb[5].mxu0  ;;  %v644_v15 = vrot.slane %v397_v10, 2 }
 0x1e8   :  { %v348_v13 = vpop.f32.mrb[2].mxu1  ;;  %v401_v14 = vpop.f32.mrb[6].mxu0  ;;  %v631_v19 = vrot.slane %v346_v11, 1 }
 0x1e9   :  { %v645_v16 = vrot.slane %v401_v14, 2  ;;  %v350_v17 = vpop.f32.mrb[3].mxu1  ;;  %v1556_v18 = vpop.f32.mrb[7].mxu0 }
 0x1ea   :  { %v632_v20 = vrot.slane %v350_v17, 1 }
 0x1eb   :  { %v651_v21 = vsel %vm648_vm3, %v644_v15, %v645_v16 }
 0x1ec   :  { %v638_v22 = vsel %vm635_vm4, %v631_v19, %v632_v20 }
 0x1ed   :  { %v640_v23 = vadd.f32 %v638_v22, %v344_v9 }
 0x1ee   :  { %v354_v24 = vpop.f32.mrb[4].mxu1  ;;  %v503_v25 = vpop.f32.mrb[8].mxu0 }
 0x1ef   :  { %v653_v26 = vadd.f32 %v651_v21, %v640_v23  ;;  %v356_v27 = vpop.f32.mrb[5].mxu1  ;;  %v1562_v28 = vpop.f32.mrb[9].mxu0  ;;  %v701_v32 = vrot.slane %v503_v25, 3 }
 0x1f0   :  { %v633_v29 = vrot.slane %v356_v27, 1  ;;  %v358_v30 = vpop.f32.mrb[6].mxu1  ;;  %v507_v31 = vpop.f32.mrb[10].mxu0 }
 0x1f1   :  { %v702_v33 = vrot.slane %v507_v31, 3  ;;  %v360_v34 = vpop.f32.mrb[7].mxu1  ;;  %v1565_v35 = vpop.f32.mrb[11].mxu0 }
 0x1f2   :  { %v637_v36 = vsel %vm635_vm4, %v632_v20, %v633_v29  ;;  %v634_v37 = vrot.slane %v360_v34, 1 }
 0x1f3   :  { %v641_v38 = vadd.f32 %v637_v36, %v348_v13  ;;  %v1571_v39 = vsel %vm705_vm5, %v701_v32, %v702_v33 }
 0x1f4   :  { %v636_v40 = vsel %vm635_vm4, %v633_v29, %v634_v37  ;;  %v639_v41 = vsel %vm635_vm4, %v634_v37, %v631_v19 }
 0x1f5   :  { %v642_v43 = vadd.f32 %v636_v40, %v354_v24  ;;  %v643_v44 = vadd.f32 %v639_v41, %v358_v30 }
 0x1f6   :  { %v407_v45 = vpop.f32.mrb[8].mxu1  ;;  %v513_v46 = vpop.f32.mrb[12].mxu0 }
 0x1f7   :  { %v646_v47 = vrot.slane %v407_v45, 2  ;;  %v703_v48 = vrot.slane %v513_v46, 3  ;;  %v1580_v49 = vpop.f32.mrb[9].mxu1  ;;  %v1582_v50 = vpop.f32.mrb[13].mxu0 }
 0x1f8   :  { %v411_v51 = vpop.f32.mrb[10].mxu1  ;;  %v517_v52 = vpop.f32.mrb[14].mxu0 }
 0x1f9   :  { %v650_v53 = vsel %vm648_vm3, %v645_v16, %v646_v47  ;;  %v1589_v54 = vsel %vm705_vm5, %v702_v33, %v703_v48  ;;  %v647_v55 = vrot.slane %v411_v51, 2  ;;  %v704_v56 = vrot.slane %v517_v52, 3  ;;  %v1591_v57 = vpop.f32.mrb[11].mxu1  ;;  %v1593_v58 = vpop.f32.mrb[15].mxu0 }
 0x1fa   :  { %v654_v59 = vadd.f32 %v650_v53, %v641_v38 }
 0x1fb   :  { %v649_v60 = vsel %vm648_vm3, %v646_v47, %v647_v55  ;;  %v652_v61 = vsel %vm648_vm3, %v647_v55, %v644_v15  ;;  %v1601_v62 = vsel %vm705_vm5, %v703_v48, %v704_v56  ;;  %v1605_v63 = vsel %vm705_vm5, %v704_v56, %v701_v32 }
 0x1fc   :  { %v660_v0 = vsel %vm658_vm6, %v654_v59, -inf  ;;  %v655_v1 = vadd.f32 %v649_v60, %v642_v43  ;;  %v656_v2 = vadd.f32 %v652_v61, %v643_v44 }
 0x1fd   :  { %v663_v3 = vmax.f32 %v653_v26, %v660_v0 }
 0x1fe   :  { %v662_v4 = vsel %vm658_vm6, %v656_v2, -inf  ;;  %v450_v5 = vpop.f32.mrb[12].mxu1  ;;  %v1611_v6 = vpop.f32.mrb[16].mxu0 }
 0x1ff   :  { %v664_v7 = vrot.slane %v663_v3, 4  ;;  %v670_v9 = vmax.f32 %v655_v1, %v662_v4  ;;  %v1613_v10 = vpop.f32.mrb[13].mxu1  ;;  %v1615_v11 = vpop.f32.mrb[17].mxu0  ;;  %v677_v13 = vrot.slane %v450_v5, 1  ;;  %v758_v14 = vrot.slane %v1611_v6, 3 }
 0x200   :  { %v454_v15 = vpop.f32.mrb[14].mxu1  ;;  %v613_v16 = vpop.f32.mrb[18].mxu0  ;;  %v689_v24 = vrot.slane %v1613_v10, 2  ;;  %v770_v25 = vrot.slane %v1615_v11, 4 }
 0x201   :  { %v665_v17 = vmax.f32 %v663_v3, %v664_v7  ;;  %v671_v19 = vrot.slane %v670_v9, 4  ;;  %v678_v20 = vrot.slane %v454_v15, 1  ;;  %v759_v21 = vrot.slane %v613_v16, 3  ;;  %v456_v22 = vpop.f32.mrb[15].mxu1  ;;  %v615_v23 = vpop.f32.mrb[19].mxu0 }
 0x202   :  { %v690_v26 = vrot.slane %v456_v22, 2  ;;  %v771_v27 = vrot.slane %v615_v23, 4 }
 0x203   :  { %v666_v29 = vrot.slane %v665_v17, 2  ;;  %v672_v30 = vmax.f32 %v670_v9, %v671_v19  ;;  %v683_v31 = vsel %vm635_vm4, %v677_v13, %v678_v20  ;;  %v1625_v32 = vsel %vm705_vm5, %v758_v14, %v759_v21 }
 0x204   :  { %v685_v33 = vadd.f32 %v683_v31, %v1552_v12  ;;  %v695_v34 = vsel %vm648_vm3, %v689_v24, %v690_v26  ;;  %v1632_v36 = vsel %vm774_vm7, %v770_v25, %v771_v27 }
 0x205   :  { %v667_v37 = vmax.f32 %v665_v17, %v666_v29  ;;  %v673_v38 = vrot.slane %v672_v30, 2 }
 0x206   :  { %v697_v40 = vadd.f32 %v695_v34, %v685_v33  ;;  %v460_v41 = vpop.f32.mrb[16].mxu1  ;;  %v619_v43 = vpop.f32.mrb[20].mxu0 }
 0x207   :  { %v674_v44 = vmax.f32 %v672_v30, %v673_v38  ;;  %v679_v45 = vrot.slane %v460_v41, 1  ;;  %v760_v46 = vrot.slane %v619_v43, 3  ;;  %v462_v47 = vpop.f32.mrb[17].mxu1  ;;  %v621_v48 = vpop.f32.mrb[21].mxu0  ;;  %v668_v12 = vrot.slane %v667_v37, 1 }
 0x208   :  { %v710_v51 = vadd.f32 %v1571_v39, %v697_v40  ;;  %v691_v52 = vrot.slane %v462_v47, 2  ;;  %v772_v53 = vrot.slane %v621_v48, 4  ;;  %v464_v55 = vpop.f32.mrb[18].mxu1  ;;  %v623_v56 = vpop.f32.mrb[22].mxu0 }
 0x209   :  { %v675_v59 = vrot.slane %v674_v44, 1  ;;  %v682_v60 = vsel %vm635_vm4, %v678_v20, %v679_v45  ;;  %v1640_v61 = vsel %vm705_vm5, %v759_v21, %v760_v46  ;;  %v680_v0 = vrot.slane %v464_v55, 1  ;;  %v466_v1 = vpop.f32.mrb[19].mxu1  ;;  %v625_v2 = vpop.f32.mrb[23].mxu0 }
 0x20a   :  { %v686_v3 = vadd.f32 %v682_v60, %v1556_v18  ;;  %v694_v39 = vsel %vm648_vm3, %v690_v26, %v691_v52  ;;  %v1647_v4 = vsel %vm774_vm7, %v771_v27, %v772_v53  ;;  %v761_v5 = vrot.slane %v623_v56, 3 }
 0x20b   :  { %v676_v6 = vmax.f32 %v674_v44, %v675_v59  ;;  %v681_v7 = vsel %vm635_vm4, %v679_v45, %v680_v0  ;;  %v684_v9 = vsel %vm635_vm4, %v680_v0, %v677_v13  ;;  %v692_v10 = vrot.slane %v466_v1, 2 }
 0x20c   :  { %v698_v11 = vadd.f32 %v694_v39, %v686_v3  ;;  %v687_v15 = vadd.f32 %v681_v7, %v1580_v49  ;;  %v688_v18 = vadd.f32 %v684_v9, %v1591_v57  ;;  %v1657_v16 = vsel %vm705_vm5, %v760_v46, %v761_v5 }
 0x20d   :  { %v1661_v17 = vsel %vm705_vm5, %v761_v5, %v758_v14  ;;  %v693_v19 = vsel %vm648_vm3, %v691_v52, %v692_v10  ;;  %v696_v13 = vsel %vm648_vm3, %v692_v10, %v689_v24  ;;  %v773_v20 = vrot.slane %v625_v2, 4 }
 0x20e   :  { %v711_v21 = vadd.f32 %v1589_v54, %v698_v11  ;;  %v699_v49 = vadd.f32 %v693_v19, %v687_v15  ;;  %v700_v22 = vadd.f32 %v696_v13, %v688_v18  ;;  %v556_v57 = vpop.f32.mrb[20].mxu1  ;;  %v669_v27 = vmax.f32 %v667_v37, %v668_v12  ;;  %v1692_v12 = vld [vmem:[%s1744_s4] sm:$0x7] }
 0x20f   :  { %v1670_v23 = vsel %vm774_vm7, %v772_v53, %v773_v20  ;;  %v1674_v14 = vsel %vm774_vm7, %v773_v20, %v770_v25  ;;  %v558_v26 = vpop.f32.mrb[21].mxu1  ;;  %v734_v33 = vrot.slane %v556_v57, 1  ;;  %v820_v46 = vsub.s32 0, %v1550_v8 }
 0x210   :  { %v717_v24 = vsel %vm715_vm8, %v711_v21, -inf  ;;  %v712_v29 = vadd.f32 %v1601_v62, %v699_v49  ;;  %v713_v54 = vadd.f32 %v1605_v63, %v700_v22  ;;  %v560_v30 = vpop.f32.mrb[22].mxu1  ;;  %v806_v40 = vsel %vm805_vm9, %v676_v6, %v669_v27 }
 0x211   :  { %v720_v31 = vmax.f32 %v710_v51, %v717_v24  ;;  %v735_v34 = vrot.slane %v560_v30, 1  ;;  %v562_v38 = vpop.f32.mrb[23].mxu1  ;;  %v746_v41 = vrot.slane %v558_v26, 2  ;;  %v821_v1 = vrot.slane %v1692_v12, %v820_v46 }
 0x212   :  { %v719_v25 = vsel %vm715_vm8, %v713_v54, -inf  ;;  %v747_v43 = vrot.slane %v562_v38, 2  ;;  %v824_v2 = vsub.s32 1, %v1550_v8 }
 0x213   :  { %v721_v37 = vrot.slane %v720_v31, 4  ;;  %v727_v44 = vmax.f32 %v712_v29, %v719_v25  ;;  %v740_v45 = vsel %vm635_vm4, %v734_v33, %v735_v34 }
 0x214   :  { %v742_v62 = vadd.f32 %v740_v45, %v1562_v28  ;;  %v752_v63 = vsel %vm648_vm3, %v746_v41, %v747_v43  ;;  %v825_v24 = vrot.slane %v1692_v12, %v824_v2 }
 0x215   :  { %v722_v47 = vmax.f32 %v720_v31, %v721_v37  ;;  %v728_v48 = vrot.slane %v727_v44, 4 }
 0x216   :  { %v754_v51 = vadd.f32 %v752_v63, %v742_v62  ;;  %v566_v52 = vpop.f32.mrb[24].mxu1 }
 0x217   :  { %v729_v53 = vmax.f32 %v727_v44, %v728_v48  ;;  %v736_v55 = vrot.slane %v566_v52, 1  ;;  %v568_v56 = vpop.f32.mrb[25].mxu1  ;;  %v723_v59 = vrot.slane %v722_v47, 2 }
 0x218   :  { %v766_v28 = vadd.f32 %v1625_v32, %v754_v51  ;;  %v748_v60 = vrot.slane %v568_v56, 2  ;;  %v570_v0 = vpop.f32.mrb[26].mxu1 }
 0x219   :  { %v730_v3 = vrot.slane %v729_v53, 2  ;;  %v739_v39 = vsel %vm635_vm4, %v735_v34, %v736_v55  ;;  %v737_v5 = vrot.slane %v570_v0, 1  ;;  %v572_v6 = vpop.f32.mrb[27].mxu1  ;;  %v724_v7 = vmax.f32 %v722_v47, %v723_v59 }
 0x21a   :  { %v779_v9 = vadd.f32 %v1632_v36, %v766_v28  ;;  %v743_v10 = vadd.f32 %v739_v39, %v1565_v35  ;;  %v751_v32 = vsel %vm648_vm3, %v747_v43, %v748_v60  ;;  %v749_v11 = vrot.slane %v572_v6, 2 }
 0x21b   :  { %v738_v15 = vsel %vm635_vm4, %v736_v55, %v737_v5  ;;  %v741_v18 = vsel %vm635_vm4, %v737_v5, %v734_v33  ;;  %v725_v19 = vrot.slane %v724_v7, 1  ;;  %v731_v13 = vmax.f32 %v729_v53, %v730_v3 }
 0x21c   :  { %v755_v20 = vadd.f32 %v751_v32, %v743_v10  ;;  %v744_v21 = vadd.f32 %v738_v15, %v1582_v50  ;;  %v745_v49 = vadd.f32 %v741_v18, %v1593_v58  ;;  %v750_v35 = vsel %vm648_vm3, %v748_v60, %v749_v11 }
 0x21d   :  { %v753_v36 = vsel %vm648_vm3, %v749_v11, %v746_v41  ;;  %v732_v22 = vrot.slane %v731_v13, 1  ;;  %v726_v29 = vmax.f32 %v724_v7, %v725_v19  ;;  %v833_v50 = vadd.f32 %v821_v1, %v806_v40 }
 0x21e   :  { %v767_v57 = vadd.f32 %v1640_v61, %v755_v20  ;;  %v756_v26 = vadd.f32 %v750_v35, %v744_v21  ;;  %v757_v27 = vadd.f32 %v753_v36, %v745_v49 }
 0x21f   :  { %v733_v54 = vmax.f32 %v731_v13, %v732_v22  ;;  %v836_v43 = vmax.f32 %v833_v50, 0.0 }
 0x220   :  { %v780_v58 = vadd.f32 %v1647_v4, %v767_v57  ;;  %v768_v30 = vadd.f32 %v1657_v16, %v756_v26  ;;  %v769_v31 = vadd.f32 %v1661_v17, %v757_v27 }
 0x221   :  { %v810_v33 = vsel %vm805_vm9, %v733_v54, %v726_v29  ;;  %v839_v16 = vpack.c.bf16 %v836_v43, %v836_v43 }
 0x222   :  { %v786_v34 = vsel %vm784_vm10, %v780_v58, -inf  ;;  %v781_v61 = vadd.f32 %v1670_v23, %v768_v30  ;;  %v782_v38 = vadd.f32 %v1674_v14, %v769_v31  ;;  %v834_v25 = vadd.f32 %v825_v24, %v810_v33 }
 0x223   :  { %v789_v41 = vmax.f32 %v779_v9, %v786_v34  ;;  %v828_v23 = vsub.s32 2, %v1550_v8  ;;  %v1181_v8 = vld [vmem:[%s1746_s6] ss:$0 sm:$0xff] }
 0x224   :  { %v788_v42 = vsel %vm784_vm10, %v782_v38, -inf  ;;  %v837_v37 = vmax.f32 %v834_v25, 0.0 }
 0x225   :  { %v790_v44 = vrot.slane %v789_v41, 4  ;;  %v796_v40 = vmax.f32 %v781_v61, %v788_v42  ;;  %v829_v52 = vrot.slane %v1692_v12, %v828_v23 }
 0x226   :  { %v840_v45 = vpack.c.bf16 %v837_v37, %v837_v37 }
 0x227   :  { %v791_v4 = vmax.f32 %v789_v41, %v790_v44  ;;  %v797_v62 = vrot.slane %v796_v40, 4 }
 0x228   :  { %1073 = vmatprep.mubr.bf16.mxu1 %v840_v45 }
 0x229   :  { %v792_v17 = vrot.slane %v791_v4, 2  ;;  %v798_v63 = vmax.f32 %v796_v40, %v797_v62  ;;  %1074 = vmatmul.mubr.bf16.vlgmr.msra.gmra.mrb[28].mxu1 %v839_v16 }
 0x22b   :  { %v799_v46 = vrot.slane %v798_v63, 2  ;;  %v793_v47 = vmax.f32 %v791_v4, %v792_v17 }
 0x22d   :  { %v800_v14 = vmax.f32 %v798_v63, %v799_v46  ;;  %v794_v48 = vrot.slane %v793_v47, 1 }
 0x22f   :  { %v801_v51 = vrot.slane %v800_v14, 1  ;;  %v795_v53 = vmax.f32 %v793_v47, %v794_v48 }
 0x231   :  { %v802_v55 = vmax.f32 %v800_v14, %v801_v51 }
 0x233   :  { %v814_v56 = vsel %vm805_vm9, %v802_v55, %v795_v53 }
 0x234   :  { %v835_v59 = vadd.f32 %v829_v52, %v814_v56 }
 0x236   :  { %v838_v28 = vmax.f32 %v835_v59, 0.0 }
 0x238   :  { %v841_v60 = vpack.c.bf16 %v838_v28, %v838_v28 }
 0x23a   :  { %1272 = vmatmul.mubr.bf16.vlgmr.msra.gmra.mrb[24].mxu0 %v841_v60 }
 0x2fc   :  { %v1228_v0 = vpop.f32.mrb[28].mxu1 }
 0x2fd   :  { %v1229_v1 = vpop.f32.mrb[29].mxu1 }
 0x2fe   :  { %v1230_v2 = vadd.f32 %v1229_v1, %v1228_v0  ;;  %v1231_v3 = vpop.f32.mrb[30].mxu1 }
 0x2ff   :  { %v1232_v39 = vpop.f32.mrb[31].mxu1 }
 0x300   :  { %v1076_v12 = vadd.f32 %v1230_v2, %v1181_v8 }
 0x30d   :  { %v1115_v5 = vpop.f32.mrb[24].mxu0 }
 0x30e   :  { %v1116_v6 = vadd.f32 %v1115_v5, %v1076_v12  ;;  %v1273_v7 = vpop.f32.mrb[25].mxu0 }
 0x30f   :  { %v1118_v9 = vpop.f32.mrb[26].mxu0 }
 0x310   :  { %1121 = vst [vmem:[#allocation7] sm:$0x3] %v1116_v6  ;;  %v1274_v10 = vpop.f32.mrb[27].mxu0 }
 0x311   :  { %1408 = shalt.err (!%p1405_p6)
}
 0x312   :  { %s1409_s6 = scalar_lea.hbm %s1747_s7, 32 }
 0x313   :  { %p1410_p7 = scmp.ne.s32.totalorder %s1747_s7, %s1409_s6  ;;  %p1413_p8 = scmp.lt.u32.totalorder %s1409_s6, %s1747_s7 }
 0x315   :  { %p1415_p9 = pnand %p1413_p8, %p1410_p7 }
 0x317   :  { %1418 = shalt.err (!%p1415_p9)
}
 0x318   :  { %1131 = dma.vmem_to_hbm [thread:$0]  %s1129_s23, 32, %s1747_s7, [#allocation4]  }
 0x319   :  { %1423 = dma.done.wait [#allocation4], 32  }
 0x31a   :  { %1424 = vsyncadd [#allocation4], 4294967264 }
 0x31b   :  { %1135 = vsyncpa [#allocation3], 1 }
 0x31c   :  { %1136 = vsyncpa [#allocation6], 1 }
 0x31d   :  { %1137 = vsyncpa [#allocation4], 1 }

</bundles_post_ra>
